<compile_context>
chip_gen: v7x
topology: tpu7x:2x2x1
jax: 0.10.0
libtpu: 0.0.40
codegen_flags: <defaults>
</compile_context>

<pallas_src>
import functools

import jax
import jax.numpy as jnp
from jax import lax
from jax.experimental import pallas as pl
from jax.experimental.pallas import tpu as pltpu

LANES = 128  # lane-dense working width (lanes = W*C, tail-padded to 128)


def resblock_kernel(x_ref, w1_ref, w2_ref, p_ref, gb_ref, out_ref,
                    *, H, inv_n, mm_dtype):
    eps = 1e-5
    f32 = jnp.float32

    x = x_ref[...]                                   # (R, 128) lane-dense input / residual
    R = x.shape[0]

    # Image-row boundary masks for the KH=3 row taps (zero the wrapped-around
    # rows at the top/bottom of every image in the batch).  Built once, reused
    # by both convs.  Pure VPU/XLU work.
    row_in_img = lax.broadcasted_iota(jnp.int32, (R, LANES), 0) % H
    not_first = row_in_img != 0            # a row above exists
    not_last = row_in_img != (H - 1)       # a row below exists

    def conv(src, w_ref):
        # KH row taps via sublane rotations + boundary mask (XLU/VPU slots,
        # which are otherwise idle), then three accumulating MXU dots against
        # the three 128-row weight bands.  bf16 operands, f32 accumulate.
        up = jnp.where(not_first, pltpu.roll(src, shift=1, axis=0), 0.0)
        dn = jnp.where(not_last, pltpu.roll(src, shift=R - 1, axis=0), 0.0)
        acc = jnp.dot(up.astype(mm_dtype), w_ref[0], preferred_element_type=f32)
        acc = acc + jnp.dot(src.astype(mm_dtype), w_ref[1], preferred_element_type=f32)
        acc = acc + jnp.dot(dn.astype(mm_dtype), w_ref[2], preferred_element_type=f32)
        return acc

    def bn(h, p_idx, g_row, b_row):
        # Train-mode BN (batch stats, biased var, eps=1e-5).  Reduce over rows
        # first (XLU), then one tiny (1,128)x(128,128) dot each against the 0/1
        # same-channel lane matrix P: it folds lanes->channel AND broadcasts the
        # per-channel stat back to every lane of that channel (pad lanes -> 0).
        # All stats math in f32.
        # TODO(synk): single-pass var (E[x^2]-E[x]^2) can cancel badly if the
        # post-conv mean grows large; switch to a shifted/two-pass variance then.
        p = p_ref[p_idx]                                           # (128, 128)
        sum_row = jnp.sum(h, axis=0, keepdims=True)                # (1, 128)
        ss_row = jnp.sum(h * h, axis=0, keepdims=True)             # (1, 128)
        mean_row = jnp.dot(sum_row, p, preferred_element_type=f32) * inv_n
        ex2_row = jnp.dot(ss_row, p, preferred_element_type=f32) * inv_n
        var_row = ex2_row - mean_row * mean_row                    # biased (train BN)
        scale_row = g_row * lax.rsqrt(var_row + eps)               # (1, 128)
        shift_row = b_row - scale_row * mean_row                   # (1, 128)
        return h * scale_row + shift_row                           # sublane broadcast

    gb = gb_ref[...]                                               # (4, 128)

    # conv1 -> bn1 -> relu   (conv biases dropped: cancel under train-mode BN)
    h1 = conv(x, w1_ref)
    y1 = jnp.maximum(bn(h1, 0, gb[0:1, :], gb[1:2, :]), 0.0)
    # conv2 -> bn2 -> +residual -> relu
    h2 = conv(y1, w2_ref)
    y2 = bn(h2, 1, gb[2:3, :], gb[3:4, :])
    out_ref[...] = jnp.maximum(x + y2, 0.0)


# ---------------------------------------------------------------------------
# One-time (per weight update) host-side preprocessing
# ---------------------------------------------------------------------------

def _conv_band_matrices(w, W, lanes, dtype):
    """(KH,KW,Ci,Co) SAME-conv weight -> (KH, lanes, lanes) banded matrices
    acting on rows laid out as (B*H, W*Ci) (lanes tail-padded), one matrix per
    KH row tap (row taps are supplied as rolled copies in the kernel)."""
    KH, KW, Ci, Co = w.shape
    pw = (KW - 1) // 2
    wi = jnp.arange(W)[:, None]
    wo = jnp.arange(W)[None, :]
    kw = wi - wo + pw                                              # (Wi, Wo)
    valid = (kw >= 0) & (kw < KW)
    kw_c = jnp.clip(kw, 0, KW - 1)
    g = w[:, kw_c, :, :]                                           # (KH, Wi, Wo, Ci, Co)
    g = jnp.where(valid[None, :, :, None, None], g, 0.0)
    g = jnp.transpose(g, (0, 1, 3, 2, 4))                          # (KH, Wi, Ci, Wo, Co)
    g = g.reshape(KH, W * Ci, W * Co)
    g = jnp.pad(g, ((0, 0), (0, lanes - W * Ci), (0, lanes - W * Co)))
    return g.astype(dtype)


def _same_channel_matrix(lanes, C, n_real):
    """(lanes, lanes) 0/1 matrix: 1 iff lanes i,j are both real and map to the
    same channel (lane layout w*C + c).  col_sum @ P = per-channel sum broadcast
    back to every lane of that channel (0 on padding lanes)."""
    lane = jnp.arange(lanes)
    real = lane < n_real
    same = (lane[:, None] % C) == (lane[None, :] % C)
    return (same & real[:, None] & real[None, :]).astype(jnp.float32)


def _per_lane_row(vec, C, lanes, n_real):
    """Broadcast a per-channel vector to a (1, lanes) lane row (0 on padding)."""
    lane = jnp.arange(lanes)
    v = vec.astype(jnp.float32)[lane % C]
    return jnp.where(lane < n_real, v, 0.0).reshape(1, lanes)


def resblock_prepare(params, W, matmul_dtype=jnp.bfloat16):
    """Precompute packed kernel operands once per weight update."""
    w1, _b1, g1, be1, w2, _b2, g2, be2 = params   # conv biases dead under train-mode BN
    KH, KW, C, Mch = w1.shape
    lx, l1 = W * C, W * Mch
    assert lx <= LANES and l1 <= LANES, "toy-size kernel: W*C and W*Cmid must fit 128 lanes"
    w1b = _conv_band_matrices(w1.astype(jnp.float32), W, LANES, matmul_dtype)   # (3,128,128)
    w2b = _conv_band_matrices(w2.astype(jnp.float32), W, LANES, matmul_dtype)   # (3,128,128)
    bn_p = jnp.stack([_same_channel_matrix(LANES, Mch, l1),
                      _same_channel_matrix(LANES, C, lx)], axis=0)              # (2,128,128)
    bn_gb = jnp.concatenate([_per_lane_row(g1, Mch, LANES, l1),
                             _per_lane_row(be1, Mch, LANES, l1),
                             _per_lane_row(g2, C, LANES, lx),
                             _per_lane_row(be2, C, LANES, lx)], axis=0)         # (4,128)
    return (w1b, w2b, bn_p, bn_gb)


@jax.jit
def resblock_forward(x_nchw, prepped):
    """x_nchw: (B, C, H, W) like the PyTorch module. Returns (B, C, H, W)."""
    w1b, w2b, bn_p, bn_gb = prepped
    B, C, H, W = x_nchw.shape
    R = B * H
    lx = W * C
    x = jnp.transpose(x_nchw, (0, 2, 3, 1)).astype(jnp.float32)        # NHWC
    x_rows = jnp.pad(x.reshape(R, lx), ((0, 0), (0, LANES - lx)))      # (R, 128)

    kernel = functools.partial(resblock_kernel, H=H, inv_n=1.0 / (B * H * W),
                               mm_dtype=w1b.dtype)
    out_rows = pl.pallas_call(
        kernel,
        out_shape=jax.ShapeDtypeStruct((R, LANES), jnp.float32),
        in_specs=[pl.BlockSpec(memory_space=pltpu.MemorySpace.VMEM)] * 5,
        out_specs=pl.BlockSpec(memory_space=pltpu.MemorySpace.VMEM),
    )(x_rows, w1b, w2b, bn_p, bn_gb)

    out = out_rows[:, :lx].reshape(B, H, W, C)
    return jnp.transpose(out, (0, 3, 1, 2))                            # NCHW


# ---------------------------------------------------------------------------
# Pure-JAX reference (keeps the conv biases; optional bf16 conv operands)
# ---------------------------------------------------------------------------

def resblock_reference(x_nchw, params, conv_dtype=jnp.float32):
    w1, b1, g1, be1, w2, b2, g2, be2 = params
    x = jnp.transpose(x_nchw, (0, 2, 3, 1)).astype(jnp.float32)
    dn_spec = ('NHWC', 'HWIO', 'NHWC')
    eps = 1e-5

    def conv(a, w):
        return lax.conv_general_dilated(
            a.astype(conv_dtype), w.astype(conv_dtype), (1, 1), 'SAME',
            dimension_numbers=dn_spec, preferred_element_type=jnp.float32)

    y = conv(x, w1) + b1
    m = y.mean(axis=(0, 1, 2))
    v = ((y - m) ** 2).mean(axis=(0, 1, 2))
    y = (y - m) / jnp.sqrt(v + eps) * g1 + be1
    y = jnp.maximum(y, 0.0)

    y2 = conv(y, w2) + b2
    m2 = y2.mean(axis=(0, 1, 2))
    v2 = ((y2 - m2) ** 2).mean(axis=(0, 1, 2))
    y2 = (y2 - m2) / jnp.sqrt(v2 + eps) * g2 + be2

    out = jnp.maximum(x + y2, 0.0)
    return jnp.transpose(out, (0, 3, 1, 2))


if __name__ == "__main__":
    # ResBlock(num_channels=4, kernel=(3, 3), middle_channels=8)
    B, C, H, W = 2, 4, 16, 16
    Mch, KH, KW = 8, 3, 3

    keys = jax.random.split(jax.random.PRNGKey(0), 9)
    w1 = 0.2 * jax.random.normal(keys[0], (KH, KW, C, Mch), jnp.float32)
    b1 = 0.1 * jax.random.normal(keys[1], (Mch,), jnp.float32)
    g1 = 1.0 + 0.1 * jax.random.normal(keys[2], (Mch,), jnp.float32)
    be1 = 0.1 * jax.random.normal(keys[3], (Mch,), jnp.float32)
    w2 = 0.2 * jax.random.normal(keys[4], (KH, KW, Mch, C), jnp.float32)
    b2 = 0.1 * jax.random.normal(keys[5], (C,), jnp.float32)
    g2 = 1.0 + 0.1 * jax.random.normal(keys[6], (C,), jnp.float32)
    be2 = 0.1 * jax.random.normal(keys[7], (C,), jnp.float32)
    params = (w1, b1, g1, be1, w2, b2, g2, be2)

    x = jax.random.normal(keys[8], (B, C, H, W), jnp.float32)

    # Exact path (f32 MXU operands): tight check against the f32 reference.
    prep_f32 = resblock_prepare(params, W, matmul_dtype=jnp.float32)
    out_f32 = jax.block_until_ready(resblock_forward(x, prep_f32))
    ref_f32 = jax.block_until_ready(resblock_reference(x, params, jnp.float32))
    assert out_f32.shape == (B, C, H, W)
    err_f32 = float(jnp.max(jnp.abs(out_f32 - ref_f32)))
    assert jnp.allclose(out_f32, ref_f32, rtol=1e-3, atol=1e-3), \
        f"f32 path max abs err = {err_f32}"

    # Fast path (bf16 MXU operands, f32 accumulate & BN): check against a
    # reference whose conv operands are also bf16, plus a loose sanity check
    # against the exact f32 reference.
    prep_bf16 = resblock_prepare(params, W, matmul_dtype=jnp.bfloat16)
    out_bf16 = jax.block_until_ready(resblock_forward(x, prep_bf16))
    ref_bf16 = jax.block_until_ready(resblock_reference(x, params, jnp.bfloat16))
    err_bf16 = float(jnp.max(jnp.abs(out_bf16 - ref_bf16)))
    assert jnp.allclose(out_bf16, ref_bf16, rtol=2e-2, atol=2e-2), \
        f"bf16 path max abs err vs bf16 reference = {err_bf16}"
    assert jnp.allclose(out_bf16, ref_f32, rtol=1e-1, atol=1e-1), \
        "bf16 path diverged from f32 reference"

    print("KERNEL_OK")
</pallas_src>

<mosaic_0001>
module attributes {stable_mosaic.version = 11 : i64} {
  func.func @resblock_kernel(%arg0: memref<32x128xf32, #tpu.memory_space<vmem>>, %arg1: memref<3x128x128xf32, #tpu.memory_space<vmem>>, %arg2: memref<3x128x128xf32, #tpu.memory_space<vmem>>, %arg3: memref<2x128x128xf32, #tpu.memory_space<vmem>>, %arg4: memref<4x128xf32, #tpu.memory_space<vmem>>, %arg5: memref<32x128xf32, #tpu.memory_space<vmem>>) attributes {dimension_semantics = [], scalar_prefetch = 0 : i64, scratch_operands = 0 : i64, tpu.core_type = #tpu.core_type<tc>} {
    %c0 = arith.constant 0 : index
    %c0_0 = arith.constant 0 : index
    %0 = vector.load %arg0[%c0, %c0_0] : memref<32x128xf32, #tpu.memory_space<vmem>>, vector<32x128xf32>
    %1 = tpu.iota {dimensions = array<i32: 0>} : vector<32x128xi32>
    %c16_i32 = arith.constant 16 : i32
    %c0_i32 = arith.constant 0 : i32
    %2 = arith.cmpi eq, %c16_i32, %c0_i32 : i32
    %c1_i32 = arith.constant 1 : i32
    %3 = arith.select %2, %c1_i32, %c16_i32 : i32
    %4 = vector.broadcast %3 : i32 to vector<32x128xi32>
    %5 = arith.remsi %1, %4 : vector<32x128xi32>
    %c0_i32_1 = arith.constant 0 : i32
    %6 = vector.broadcast %c0_i32_1 : i32 to vector<32x128xi32>
    %7 = arith.cmpi ne, %5, %6 : vector<32x128xi32>
    %c0_i32_2 = arith.constant 0 : i32
    %8 = vector.broadcast %c0_i32_2 : i32 to vector<32x128xi32>
    %9 = arith.cmpi slt, %5, %8 : vector<32x128xi32>
    %c0_i32_3 = arith.constant 0 : i32
    %10 = arith.cmpi slt, %3, %c0_i32_3 : i32
    %11 = vector.broadcast %10 : i1 to vector<32x128xi1>
    %12 = vector.broadcast %11 : vector<32x128xi1> to vector<32x128xi1>
    %13 = arith.xori %9, %12 : vector<32x128xi1>
    %14 = arith.andi %13, %7 : vector<32x128xi1>
    %15 = vector.broadcast %3 : i32 to vector<32x128xi32>
    %16 = arith.addi %5, %15 : vector<32x128xi32>
    %17 = arith.select %14, %16, %5 : vector<32x128xi1>, vector<32x128xi32>
    %c0_i32_4 = arith.constant 0 : i32
    %18 = vector.broadcast %c0_i32_4 : i32 to vector<32x128xi32>
    %19 = arith.cmpi ne, %17, %18 : vector<32x128xi32>
    %c15_i32 = arith.constant 15 : i32
    %20 = vector.broadcast %c15_i32 : i32 to vector<32x128xi32>
    %21 = arith.cmpi ne, %17, %20 : vector<32x128xi32>
    %c0_5 = arith.constant 0 : index
    %c0_6 = arith.constant 0 : index
    %22 = vector.load %arg4[%c0_5, %c0_6] : memref<4x128xf32, #tpu.memory_space<vmem>>, vector<4x128xf32>
    %c1_i32_7 = arith.constant 1 : i32
    %23 = tpu.dynamic_rotate %0 by %c1_i32_7 dim 0 : vector<32x128xf32>, i32 -> vector<32x128xf32>
    %cst = arith.constant 0.000000e+00 : f32
    %24 = vector.broadcast %cst : f32 to vector<32x128xf32>
    %25 = arith.select %19, %23, %24 : vector<32x128xi1>, vector<32x128xf32>
    %c31_i32 = arith.constant 31 : i32
    %26 = tpu.dynamic_rotate %0 by %c31_i32 dim 0 : vector<32x128xf32>, i32 -> vector<32x128xf32>
    %cst_8 = arith.constant 0.000000e+00 : f32
    %27 = vector.broadcast %cst_8 : f32 to vector<32x128xf32>
    %28 = arith.select %21, %26, %27 : vector<32x128xi1>, vector<32x128xf32>
    %c0_9 = arith.constant 0 : index
    %c0_10 = arith.constant 0 : index
    %c0_11 = arith.constant 0 : index
    %29 = vector.load %arg1[%c0_9, %c0_10, %c0_11] : memref<3x128x128xf32, #tpu.memory_space<vmem>>, vector<1x128x128xf32>
    %30 = vector.shape_cast %29 : vector<1x128x128xf32> to vector<128x128xf32>
    %cst_12 = arith.constant dense<0.000000e+00> : vector<32x128xf32>
    %31 = tpu.matmul %25, %30, %cst_12 {dimension_numbers = #tpu.dot_dimension_numbers<[1], [0], [0], [1], [0, 0, 1, 1], [], []>} : vector<32x128xf32>, vector<128x128xf32>, vector<32x128xf32> -> vector<32x128xf32>
    %c1 = arith.constant 1 : index
    %c0_13 = arith.constant 0 : index
    %c0_14 = arith.constant 0 : index
    %32 = vector.load %arg1[%c1, %c0_13, %c0_14] : memref<3x128x128xf32, #tpu.memory_space<vmem>>, vector<1x128x128xf32>
    %33 = vector.shape_cast %32 : vector<1x128x128xf32> to vector<128x128xf32>
    %cst_15 = arith.constant dense<0.000000e+00> : vector<32x128xf32>
    %34 = tpu.matmul %0, %33, %cst_15 {dimension_numbers = #tpu.dot_dimension_numbers<[1], [0], [0], [1], [0, 0, 1, 1], [], []>} : vector<32x128xf32>, vector<128x128xf32>, vector<32x128xf32> -> vector<32x128xf32>
    %35 = arith.addf %31, %34 : vector<32x128xf32>
    %c2 = arith.constant 2 : index
    %c0_16 = arith.constant 0 : index
    %c0_17 = arith.constant 0 : index
    %36 = vector.load %arg1[%c2, %c0_16, %c0_17] : memref<3x128x128xf32, #tpu.memory_space<vmem>>, vector<1x128x128xf32>
    %37 = vector.shape_cast %36 : vector<1x128x128xf32> to vector<128x128xf32>
    %cst_18 = arith.constant dense<0.000000e+00> : vector<32x128xf32>
    %38 = tpu.matmul %28, %37, %cst_18 {dimension_numbers = #tpu.dot_dimension_numbers<[1], [0], [0], [1], [0, 0, 1, 1], [], []>} : vector<32x128xf32>, vector<128x128xf32>, vector<32x128xf32> -> vector<32x128xf32>
    %39 = arith.addf %35, %38 : vector<32x128xf32>
    %40 = vector.extract_strided_slice %22 {offsets = [0, 0], sizes = [1, 128], strides = [1, 1]} : vector<4x128xf32> to vector<1x128xf32>
    %41 = vector.extract_strided_slice %22 {offsets = [1, 0], sizes = [1, 128], strides = [1, 1]} : vector<4x128xf32> to vector<1x128xf32>
    %c0_19 = arith.constant 0 : index
    %c0_20 = arith.constant 0 : index
    %c0_21 = arith.constant 0 : index
    %42 = vector.load %arg3[%c0_19, %c0_20, %c0_21] : memref<2x128x128xf32, #tpu.memory_space<vmem>>, vector<1x128x128xf32>
    %43 = vector.shape_cast %42 : vector<1x128x128xf32> to vector<128x128xf32>
    %cst_22 = arith.constant dense<0.000000e+00> : vector<128xf32>
    %44 = vector.multi_reduction <add>, %39, %cst_22 [0] : vector<32x128xf32> to vector<128xf32>
    %45 = vector.shape_cast %44 : vector<128xf32> to vector<1x128xf32>
    %46 = arith.mulf %39, %39 : vector<32x128xf32>
    %cst_23 = arith.constant dense<0.000000e+00> : vector<128xf32>
    %47 = vector.multi_reduction <add>, %46, %cst_23 [0] : vector<32x128xf32> to vector<128xf32>
    %48 = vector.shape_cast %47 : vector<128xf32> to vector<1x128xf32>
    %cst_24 = arith.constant dense<0.000000e+00> : vector<1x128xf32>
    %49 = tpu.matmul %45, %43, %cst_24 {dimension_numbers = #tpu.dot_dimension_numbers<[1], [0], [0], [1], [0, 0, 1, 1], [], []>} : vector<1x128xf32>, vector<128x128xf32>, vector<1x128xf32> -> vector<1x128xf32>
    %cst_25 = arith.constant 0.001953125 : f32
    %50 = vector.broadcast %cst_25 : f32 to vector<1x128xf32>
    %51 = arith.mulf %49, %50 : vector<1x128xf32>
    %cst_26 = arith.constant dense<0.000000e+00> : vector<1x128xf32>
    %52 = tpu.matmul %48, %43, %cst_26 {dimension_numbers = #tpu.dot_dimension_numbers<[1], [0], [0], [1], [0, 0, 1, 1], [], []>} : vector<1x128xf32>, vector<128x128xf32>, vector<1x128xf32> -> vector<1x128xf32>
    %cst_27 = arith.constant 0.001953125 : f32
    %53 = vector.broadcast %cst_27 : f32 to vector<1x128xf32>
    %54 = arith.mulf %52, %53 : vector<1x128xf32>
    %55 = arith.mulf %51, %51 : vector<1x128xf32>
    %56 = arith.subf %54, %55 : vector<1x128xf32>
    %cst_28 = arith.constant 9.99999974E-6 : f32
    %57 = vector.broadcast %cst_28 : f32 to vector<1x128xf32>
    %58 = arith.addf %56, %57 : vector<1x128xf32>
    %59 = math.rsqrt %58 : vector<1x128xf32>
    %60 = arith.mulf %40, %59 : vector<1x128xf32>
    %61 = arith.mulf %60, %51 : vector<1x128xf32>
    %62 = arith.subf %41, %61 : vector<1x128xf32>
    %63 = vector.broadcast %60 : vector<1x128xf32> to vector<32x128xf32>
    %64 = arith.mulf %39, %63 : vector<32x128xf32>
    %65 = vector.broadcast %62 : vector<1x128xf32> to vector<32x128xf32>
    %66 = arith.addf %64, %65 : vector<32x128xf32>
    %cst_29 = arith.constant 0.000000e+00 : f32
    %67 = vector.broadcast %cst_29 : f32 to vector<32x128xf32>
    %68 = arith.maximumf %66, %67 : vector<32x128xf32>
    %c1_i32_30 = arith.constant 1 : i32
    %69 = tpu.dynamic_rotate %68 by %c1_i32_30 dim 0 : vector<32x128xf32>, i32 -> vector<32x128xf32>
    %cst_31 = arith.constant 0.000000e+00 : f32
    %70 = vector.broadcast %cst_31 : f32 to vector<32x128xf32>
    %71 = arith.select %19, %69, %70 : vector<32x128xi1>, vector<32x128xf32>
    %c31_i32_32 = arith.constant 31 : i32
    %72 = tpu.dynamic_rotate %68 by %c31_i32_32 dim 0 : vector<32x128xf32>, i32 -> vector<32x128xf32>
    %cst_33 = arith.constant 0.000000e+00 : f32
    %73 = vector.broadcast %cst_33 : f32 to vector<32x128xf32>
    %74 = arith.select %21, %72, %73 : vector<32x128xi1>, vector<32x128xf32>
    %c0_34 = arith.constant 0 : index
    %c0_35 = arith.constant 0 : index
    %c0_36 = arith.constant 0 : index
    %75 = vector.load %arg2[%c0_34, %c0_35, %c0_36] : memref<3x128x128xf32, #tpu.memory_space<vmem>>, vector<1x128x128xf32>
    %76 = vector.shape_cast %75 : vector<1x128x128xf32> to vector<128x128xf32>
    %cst_37 = arith.constant dense<0.000000e+00> : vector<32x128xf32>
    %77 = tpu.matmul %71, %76, %cst_37 {dimension_numbers = #tpu.dot_dimension_numbers<[1], [0], [0], [1], [0, 0, 1, 1], [], []>} : vector<32x128xf32>, vector<128x128xf32>, vector<32x128xf32> -> vector<32x128xf32>
    %c1_38 = arith.constant 1 : index
    %c0_39 = arith.constant 0 : index
    %c0_40 = arith.constant 0 : index
    %78 = vector.load %arg2[%c1_38, %c0_39, %c0_40] : memref<3x128x128xf32, #tpu.memory_space<vmem>>, vector<1x128x128xf32>
    %79 = vector.shape_cast %78 : vector<1x128x128xf32> to vector<128x128xf32>
    %cst_41 = arith.constant dense<0.000000e+00> : vector<32x128xf32>
    %80 = tpu.matmul %68, %79, %cst_41 {dimension_numbers = #tpu.dot_dimension_numbers<[1], [0], [0], [1], [0, 0, 1, 1], [], []>} : vector<32x128xf32>, vector<128x128xf32>, vector<32x128xf32> -> vector<32x128xf32>
    %81 = arith.addf %77, %80 : vector<32x128xf32>
    %c2_42 = arith.constant 2 : index
    %c0_43 = arith.constant 0 : index
    %c0_44 = arith.constant 0 : index
    %82 = vector.load %arg2[%c2_42, %c0_43, %c0_44] : memref<3x128x128xf32, #tpu.memory_space<vmem>>, vector<1x128x128xf32>
    %83 = vector.shape_cast %82 : vector<1x128x128xf32> to vector<128x128xf32>
    %cst_45 = arith.constant dense<0.000000e+00> : vector<32x128xf32>
    %84 = tpu.matmul %74, %83, %cst_45 {dimension_numbers = #tpu.dot_dimension_numbers<[1], [0], [0], [1], [0, 0, 1, 1], [], []>} : vector<32x128xf32>, vector<128x128xf32>, vector<32x128xf32> -> vector<32x128xf32>
    %85 = arith.addf %81, %84 : vector<32x128xf32>
    %86 = vector.extract_strided_slice %22 {offsets = [2, 0], sizes = [1, 128], strides = [1, 1]} : vector<4x128xf32> to vector<1x128xf32>
    %87 = vector.extract_strided_slice %22 {offsets = [3, 0], sizes = [1, 128], strides = [1, 1]} : vector<4x128xf32> to vector<1x128xf32>
    %c1_46 = arith.constant 1 : index
    %c0_47 = arith.constant 0 : index
    %c0_48 = arith.constant 0 : index
    %88 = vector.load %arg3[%c1_46, %c0_47, %c0_48] : memref<2x128x128xf32, #tpu.memory_space<vmem>>, vector<1x128x128xf32>
    %89 = vector.shape_cast %88 : vector<1x128x128xf32> to vector<128x128xf32>
    %cst_49 = arith.constant dense<0.000000e+00> : vector<128xf32>
    %90 = vector.multi_reduction <add>, %85, %cst_49 [0] : vector<32x128xf32> to vector<128xf32>
    %91 = vector.shape_cast %90 : vector<128xf32> to vector<1x128xf32>
    %92 = arith.mulf %85, %85 : vector<32x128xf32>
    %cst_50 = arith.constant dense<0.000000e+00> : vector<128xf32>
    %93 = vector.multi_reduction <add>, %92, %cst_50 [0] : vector<32x128xf32> to vector<128xf32>
    %94 = vector.shape_cast %93 : vector<128xf32> to vector<1x128xf32>
    %cst_51 = arith.constant dense<0.000000e+00> : vector<1x128xf32>
    %95 = tpu.matmul %91, %89, %cst_51 {dimension_numbers = #tpu.dot_dimension_numbers<[1], [0], [0], [1], [0, 0, 1, 1], [], []>} : vector<1x128xf32>, vector<128x128xf32>, vector<1x128xf32> -> vector<1x128xf32>
    %cst_52 = arith.constant 0.001953125 : f32
    %96 = vector.broadcast %cst_52 : f32 to vector<1x128xf32>
    %97 = arith.mulf %95, %96 : vector<1x128xf32>
    %cst_53 = arith.constant dense<0.000000e+00> : vector<1x128xf32>
    %98 = tpu.matmul %94, %89, %cst_53 {dimension_numbers = #tpu.dot_dimension_numbers<[1], [0], [0], [1], [0, 0, 1, 1], [], []>} : vector<1x128xf32>, vector<128x128xf32>, vector<1x128xf32> -> vector<1x128xf32>
    %cst_54 = arith.constant 0.001953125 : f32
    %99 = vector.broadcast %cst_54 : f32 to vector<1x128xf32>
    %100 = arith.mulf %98, %99 : vector<1x128xf32>
    %101 = arith.mulf %97, %97 : vector<1x128xf32>
    %102 = arith.subf %100, %101 : vector<1x128xf32>
    %cst_55 = arith.constant 9.99999974E-6 : f32
    %103 = vector.broadcast %cst_55 : f32 to vector<1x128xf32>
    %104 = arith.addf %102, %103 : vector<1x128xf32>
    %105 = math.rsqrt %104 : vector<1x128xf32>
    %106 = arith.mulf %86, %105 : vector<1x128xf32>
    %107 = arith.mulf %106, %97 : vector<1x128xf32>
    %108 = arith.subf %87, %107 : vector<1x128xf32>
    %109 = vector.broadcast %106 : vector<1x128xf32> to vector<32x128xf32>
    %110 = arith.mulf %85, %109 : vector<32x128xf32>
    %111 = vector.broadcast %108 : vector<1x128xf32> to vector<32x128xf32>
    %112 = arith.addf %110, %111 : vector<32x128xf32>
    %113 = arith.addf %0, %112 : vector<32x128xf32>
    %cst_56 = arith.constant 0.000000e+00 : f32
    %114 = vector.broadcast %cst_56 : f32 to vector<32x128xf32>
    %115 = arith.maximumf %113, %114 : vector<32x128xf32>
    %c0_57 = arith.constant 0 : index
    %c0_58 = arith.constant 0 : index
    %116 = vector.load %arg5[%c0_57, %c0_58] : memref<32x128xf32, #tpu.memory_space<vmem>>, vector<32x128xf32>
    tpu.vector_store %arg5[%c0_57, %c0_58], %115 {strides = array<i32>} : memref<32x128xf32, #tpu.memory_space<vmem>>, vector<32x128xf32>,
    return
  }
}

</mosaic_0001>

<bundles_post_ra>
// kernel: resblock_forward.1
= control target key start
LH: loop header
LB: loop body
LE: loop exit
PB: predicated region body
PF: predicated region fallthrough
CT: control target
= control target key end

     0   :  { %10 = vsyncpa [#allocation3], 0  ;;  %s2634_s0 = inlined_call_operand.vmem [shape: f32[32,128], index: 0, kind: input, shape index: {}]   ;;  %s2635_s1 = inlined_call_operand.vmem [shape: f32[3,128,128], index: 1, kind: input, shape index: {}]   ;;  %s2636_s2 = inlined_call_operand.hbm [shape: f32[3,128,128], index: 2, kind: input, shape index: {}]   ;;  %s2637_s3 = inlined_call_operand.hbm [shape: f32[2,128,128], index: 3, kind: input, shape index: {}]   ;;  %s2638_s4 = inlined_call_operand.vmem [shape: f32[4,128], index: 4, kind: input, shape index: {}]   ;;  %s2639_s5 = inlined_call_operand.vmem [shape: f32[32,128], index: 5, kind: output, shape index: {}]  }
   0x1   :  { %11 = vsyncpa [#allocation5], 0  ;;  %s2183_s18 = smov [#allocation2]   ;;  %s2135_s22 = scalar_lea.hbm %s2636_s2, 6144 }
   0x2   :  { %s21_s19 = sshll.u32 %s2183_s18, 4  ;;  %p2136_p0 = scmp.ne.s32.totalorder %s2636_s2, %s2135_s22  ;;  %s22_s19 = int_to_ptr.vmem [resolvable:$true] %s21_s19 }
   0x3   :  { %p2139_p1 = scmp.lt.u32.totalorder %s2135_s22, %s2636_s2 }
   0x5   :  { %p2141_p2 = pnand %p2139_p1, %p2136_p0 }
   0x7   :  { %2144 = shalt.err (!%p2141_p2)
}
   0x8   :  { %s2145_s27 = scalar_lea.vmem %s22_s19, 6144  ;;  %p2150_p4 = scmp.lt.s32.totalorder %s22_s19, %s22_s19 }
   0x9   :  { %p2146_p3 = scmp.ne.s32.totalorder %s22_s19, %s2145_s27  ;;  %p2151_p5 = scmp.lt.s32.totalorder %s2145_s27, %s2145_s27 }
   0xb   :  { %p2152_p6 = por %p2151_p5, %p2150_p4 }
   0xd   :  { %p2153_p7 = pnand %p2152_p6, %p2146_p3 }
   0xf   :  { %2156 = shalt.err (!%p2153_p7)
}
  0x10   :  { %s2184_s28 = smov 128   ;;  %s2185_s29 = smov 8  }
  0x11   :  { %27 = dma.hbm_to_vmem [thread:$0]  %s2636_s2, 6144, %s22_s19, [#allocation3], %s2184_s28, %s2184_s28, %s2185_s29  }
  0x12   :  { %s2186_s7 = smov [#allocation4]   ;;  %s2157_s11 = scalar_lea.hbm %s2637_s3, 4096 }
  0x13   :  { %s33_s8 = sshll.u32 %s2186_s7, 4  ;;  %p2158_p8 = scmp.ne.s32.totalorder %s2637_s3, %s2157_s11  ;;  %s34_s8 = int_to_ptr.vmem [resolvable:$true] %s33_s8 }
  0x14   :  { %p2161_p9 = scmp.lt.u32.totalorder %s2157_s11, %s2637_s3 }
  0x16   :  { %p2163_p10 = pnand %p2161_p9, %p2158_p8 }
  0x18   :  { %2166 = shalt.err (!%p2163_p10)
}
  0x19   :  { %s2167_s16 = scalar_lea.vmem %s34_s8, 4096  ;;  %p2172_p12 = scmp.lt.s32.totalorder %s34_s8, %s34_s8 }
  0x1a   :  { %p2168_p11 = scmp.ne.s32.totalorder %s34_s8, %s2167_s16  ;;  %p2173_p13 = scmp.lt.s32.totalorder %s2167_s16, %s2167_s16 }
  0x1c   :  { %p2174_p0 = por %p2173_p13, %p2172_p12 }
  0x1e   :  { %p2175_p1 = pnand %p2174_p0, %p2168_p11 }
  0x20   :  { %2178 = shalt.err (!%p2175_p1)
}
  0x21   :  { %39 = dma.hbm_to_vmem [thread:$0]  %s2637_s3, 4096, %s34_s8, [#allocation5], %s2184_s28, %s2184_s28, %s2185_s29  }
  0x22   :  { %2179 = dma.done.wait [#allocation3], 6144  }
  0x23   :  { %2180 = vsyncadd [#allocation3], 4294961152 }
  0x24   :  { %2181 = dma.done.wait [#allocation5], 4096  }
  0x25   :  { %2182 = vsyncadd [#allocation5], 4294963200  ;;  %v2187_v0 = vmov 0.0|0.0   ;;  %v1223_v1 = vld [vmem:[%s2635_s1 + $0x80] sm:$0xff]  ;;  %v1224_v2 = vld [vmem:[%s2635_s1 + $0x88] sm:$0xff]  ;;  %v52_v35 = vlaneseq  ;;  %vm2188_vm6 = vmmov 0  }
  0x26   :  { %1915 = vmatprep.subr.bf16.mxu1 %v2187_v0  ;;  %v1225_v3 = vld [vmem:[%s2635_s1 + $0x90] sm:$0xff]  ;;  %v1819_v4 = vpack.c.bf16 %v1224_v2, %v1223_v1  ;;  %v1226_v5 = vld [vmem:[%s2635_s1 + $0x98] sm:$0xff]  ;;  %v1227_v7 = vld [vmem:[%s2635_s1 + $0xa0] sm:$0xff] }
  0x27   :  { %v1823_v6 = vpack.c.bf16 %v1226_v5, %v1225_v3  ;;  %v1228_v8 = vld [vmem:[%s2635_s1 + $0xa8] sm:$0xff]  ;;  %v2266_v10 = vld [vmem:[%s2634_s0] sm:$0xff]  ;;  %v1229_v11 = vld [vmem:[%s2635_s1 + $0xb0] sm:$0xff]  ;;  %v2316_v39 = vshrl.u32 %v52_v35, 7 }
  0x28   :  { %1820 = vmatprep.subr.bf16.mxu0 %v1819_v4  ;;  %v1827_v9 = vpack.c.bf16 %v1228_v8, %v1227_v7  ;;  %v1230_v12 = vld [vmem:[%s2635_s1 + $0xb8] sm:$0xff]  ;;  %1483 = vmatprep.mubr.f32.mxu0 %v2266_v10  ;;  %v1231_v14 = vld [vmem:[%s2635_s1 + $0xc0] sm:$0xff]  ;;  %v1232_v15 = vld [vmem:[%s2635_s1 + $0xc8] sm:$0xff]  ;;  %v114_v44 = vrot.slane %v2266_v10, 7 }
  0x29   :  { %1822 = vmatpush3.bf16.msra.mxu0 %v1819_v4  ;;  %v1831_v13 = vpack.c.bf16 %v1230_v12, %v1229_v11  ;;  %v1835_v16 = vpack.c.bf16 %v1232_v15, %v1231_v14  ;;  %v1233_v17 = vld [vmem:[%s2635_s1 + $0xd0] sm:$0xff]  ;;  %v1234_v18 = vld [vmem:[%s2635_s1 + $0xd8] sm:$0xff]  ;;  %v1235_v20 = vld [vmem:[%s2635_s1 + $0xe0] sm:$0xff]  ;;  %v61_v48 = vand.u32 15, %v2316_v39  ;;  %vm118_vm0 = vcmp.lt.s32.totalorder %v2316_v39, 1 }
  0x2a   :  { %1824 = vmatprep.subr.bf16.mxu0 %v1823_v6  ;;  %v1839_v19 = vpack.c.bf16 %v1234_v18, %v1233_v17  ;;  %v449_v21 = vld [vmem:[#allocation4] sm:$0xff]  ;;  %v450_v22 = vld [vmem:[#allocation4 + $0x8] sm:$0xff]  ;;  %v451_v25 = vld [vmem:[#allocation4 + $0x10] sm:$0xff]  ;;  %v55_v5 = vadd.s32 16, %v2316_v39  ;;  %vm131_vm3 = vcmp.lt.s32.totalorder %v2316_v39, 7 }
  0x2b   :  { %v1236_v23 = vld [vmem:[%s2635_s1 + $0xe8] sm:$0xff]  ;;  %v2293_v24 = vpack.c.bf16 %v450_v22, %v449_v21  ;;  %v452_v26 = vld [vmem:[#allocation4 + $0x18] sm:$0xff]  ;;  %v453_v29 = vld [vmem:[#allocation4 + $0x20] sm:$0xff]  ;;  %vm2352_vm1 = vcmp.ne.s32.totalorder %v61_v48, 0 }
  0x2c   :  { %v2296_v27 = vpack.c.bf16 %v452_v26, %v451_v25  ;;  %v1843_v28 = vpack.c.bf16 %v1236_v23, %v1235_v20  ;;  %v454_v30 = vld [vmem:[#allocation4 + $0x28] sm:$0xff]  ;;  %v1237_v31 = vld [vmem:[%s2635_s1 + $0xf0] sm:$0xff]  ;;  %v1238_v32 = vld [vmem:[%s2635_s1 + $0xf8] sm:$0xff]  ;;  %v75_v11 = vand.u32 15, %v55_v5  ;;  %v127_v20 = vrot.slane %v2266_v10, 1 }
  0x2d   :  { %1826 = vmatpush3.bf16.msra.mxu0 %v1823_v6  ;;  %1917 = vmatpush3.bf16.msra.mxu1 %v2293_v24  ;;  %v2306_v33 = vpack.c.bf16 %v454_v30, %v453_v29  ;;  %v1847_v34 = vpack.c.bf16 %v1238_v32, %v1237_v31  ;;  %v140_v36 = vld [vmem:[%s2635_s1] sm:$0xff]  ;;  %v141_v37 = vld [vmem:[%s2635_s1 + $0x8] sm:$0xff]  ;;  %v142_v40 = vld [vmem:[%s2635_s1 + $0x10] sm:$0xff] }
  0x2e   :  { %1828 = vmatprep.subr.bf16.mxu0 %v1827_v9  ;;  %1918 = vmatprep.subr.bf16.mxu1 %v2187_v0  ;;  %v1851_v38 = vpack.c.bf16 %v141_v37, %v140_v36  ;;  %v143_v41 = vld [vmem:[%s2635_s1 + $0x18] sm:$0xff]  ;;  %v2333_v43 = vld [vmem:[%s2634_s0 + $0x8] sm:$0xff]  ;;  %v2339_v46 = vld [vmem:[%s2634_s0 + $0x10] sm:$0xff]  ;;  %vm2410_vm2 = vcmp.ne.s32.totalorder %v75_v11, 0 }
  0x2f   :  { %v2328_v42 = vld [vmem:[%s2634_s0 + $0x18] sm:$0xff]  ;;  %v1855_v45 = vpack.c.bf16 %v143_v41, %v142_v40  ;;  %v144_v49 = vld [vmem:[%s2635_s1 + $0x20] sm:$0xff]  ;;  %v145_v50 = vld [vmem:[%s2635_s1 + $0x28] sm:$0xff]  ;;  %v116_v12 = vrot.slane %v2339_v46, 7  ;;  %v128_v21 = vrot.slane %v2333_v43, 1 }
  0x30   :  { %v117_v47 = vrot.slane %v2328_v42, 7  ;;  %v1859_v51 = vpack.c.bf16 %v145_v50, %v144_v49  ;;  %v146_v54 = vld [vmem:[%s2635_s1 + $0x30] sm:$0xff]  ;;  %v147_v55 = vld [vmem:[%s2635_s1 + $0x38] sm:$0xff]  ;;  %v148_v57 = vld [vmem:[%s2635_s1 + $0x40] sm:$0xff]  ;;  %v129_v49 = vrot.slane %v2339_v46, 1 }
  0x31   :  { %1830 = vmatpush3.bf16.msra.mxu0 %v1827_v9  ;;  %1920 = vmatpush3.bf16.msra.mxu1 %v2296_v27  ;;  %v1863_v56 = vpack.c.bf16 %v147_v55, %v146_v54  ;;  %v149_v58 = vld [vmem:[%s2635_s1 + $0x48] sm:$0xff]  ;;  %v150_v60 = vld [vmem:[%s2635_s1 + $0x50] sm:$0xff]  ;;  %v151_v61 = vld [vmem:[%s2635_s1 + $0x58] sm:$0xff]  ;;  %v115_v9 = vrot.slane %v2333_v43, 7  ;;  %v134_v26 = vsel %vm131_vm3, %v127_v20, %v128_v21 }
  0x32   :  { %1832 = vmatprep.subr.bf16.mxu0 %v1831_v13  ;;  %1921 = vmatprep.subr.bf16.mxu1 %v2187_v0  ;;  %v122_v53 = vsel %vm118_vm0, %v117_v47, %v114_v44  ;;  %v1867_v59 = vpack.c.bf16 %v149_v58, %v148_v57  ;;  %v1871_v62 = vpack.c.bf16 %v151_v61, %v150_v60  ;;  %v152_v63 = vld [vmem:[%s2635_s1 + $0x60] sm:$0xff]  ;;  %v153_v1 = vld [vmem:[%s2635_s1 + $0x68] sm:$0xff]  ;;  %v154_v3 = vld [vmem:[%s2635_s1 + $0x70] sm:$0xff] }
  0x33   :  { %v1875_v2 = vpack.c.bf16 %v153_v1, %v152_v63  ;;  %v155_v4 = vld [vmem:[%s2635_s1 + $0x78] sm:$0xff]  ;;  %v1241_v7 = vld [vmem:[%s2635_s1 + $0x100] sm:$0xff]  ;;  %v1242_v8 = vld [vmem:[%s2635_s1 + $0x108] sm:$0xff]  ;;  %v119_v10 = vsel %vm118_vm0, %v116_v12, %v117_v47  ;;  %v54_v47 = vadd.s32 8, %v2316_v39  ;;  %v133_v55 = vsel %vm131_vm3, %v128_v21, %v129_v49 }
  0x34   :  { %v1879_v6 = vpack.c.bf16 %v155_v4, %v154_v3  ;;  %v1243_v14 = vld [vmem:[%s2635_s1 + $0x110] sm:$0xff]  ;;  %v1244_v15 = vld [vmem:[%s2635_s1 + $0x118] sm:$0xff]  ;;  %v1245_v22 = vld [vmem:[%s2635_s1 + $0x120] sm:$0xff] }
  0x35   :  { %1834 = vmatpush3.bf16.msra.mxu0 %v1831_v13  ;;  %1923 = vmatpush3.bf16.msra.mxu1 %v2306_v33  ;;  %v1883_v13 = vpack.c.bf16 %v1242_v8, %v1241_v7  ;;  %v1887_v18 = vpack.c.bf16 %v1244_v15, %v1243_v14  ;;  %v1246_v23 = vld [vmem:[%s2635_s1 + $0x128] sm:$0xff]  ;;  %v1248_v29 = vld [vmem:[%s2635_s1 + $0x138] sm:$0xff]  ;;  %v1249_v31 = vld [vmem:[%s2635_s1 + $0x140] sm:$0xff]  ;;  %v68_v50 = vand.u32 15, %v54_v47 }
  0x36   :  { %1836 = vmatprep.subr.bf16.mxu0 %v1835_v16  ;;  %1924 = vmatprep.subr.bf16.mxu1 %v2187_v0  ;;  %v1891_v25 = vpack.c.bf16 %v1246_v23, %v1245_v22  ;;  %v1250_v32 = vld [vmem:[%s2635_s1 + $0x148] sm:$0xff]  ;;  %v1251_v35 = vld [vmem:[%s2635_s1 + $0x150] sm:$0xff]  ;;  %v1252_v36 = vld [vmem:[%s2635_s1 + $0x158] sm:$0xff] }
  0x37   :  { %v1903_v37 = vpack.c.bf16 %v1252_v36, %v1251_v35  ;;  %v1254_v40 = vld [vmem:[%s2635_s1 + $0x168] sm:$0xff]  ;;  %vm2467_vm4 = vcmp.ne.s32.totalorder %v68_v50, 15  ;;  %v455_v60 = vld [vmem:[#allocation4 + $0x30] sm:$0xff]  ;;  %v456_v61 = vld [vmem:[#allocation4 + $0x38] sm:$0xff] }
  0x38   :  { %v457_v63 = vld [vmem:[#allocation4 + $0x40] sm:$0xff]  ;;  %v458_v1 = vld [vmem:[#allocation4 + $0x48] sm:$0xff]  ;;  %v459_v3 = vld [vmem:[#allocation4 + $0x50] sm:$0xff] }
  0x39   :  { %1838 = vmatpush3.bf16.msra.mxu0 %v1835_v16  ;;  %v121_v16 = vsel %vm118_vm0, %v114_v44, %v115_v9  ;;  %v1255_v44 = vld [vmem:[%s2635_s1 + $0x170] sm:$0xff]  ;;  %v460_v4 = vld [vmem:[#allocation4 + $0x58] sm:$0xff]  ;;  %v462_v7 = vld [vmem:[#allocation4 + $0x68] sm:$0xff] }
  0x3a   :  { %1840 = vmatprep.subr.bf16.mxu0 %v1839_v19  ;;  %v1931_v5 = vpack.c.bf16 %v460_v4, %v459_v3  ;;  %v464_v11 = vld [vmem:[#allocation4 + $0x78] sm:$0xff]  ;;  %v702_v47 = vld [vmem:[#allocation2 + $0x90] sm:$0xff]  ;;  %v704_v50 = vld [vmem:[#allocation2 + $0xa0] sm:$0xff] }
  0x3b   :  { %v713_v3 = vld [vmem:[#allocation2 + $0xe8] sm:$0xff]  ;;  %v714_v4 = vld [vmem:[#allocation2 + $0xf0] sm:$0xff]  ;;  %v698_v52 = vld [vmem:[#allocation2 + $0x78] sm:$0xff] }
  0x3c   :  { %v1003_v54 = vld [vmem:[#allocation4 + $0xd0] sm:$0xff]  ;;  %v1005_v58 = vld [vmem:[#allocation4 + $0xe0] sm:$0xff] }
  0x3d   :  { %1842 = vmatpush3.bf16.msra.mxu0 %v1839_v19  ;;  %v120_v19 = vsel %vm118_vm0, %v115_v9, %v116_v12  ;;  %v463_v9 = vld [vmem:[#allocation4 + $0x70] sm:$0xff] }
  0x3e   :  { %1844 = vmatprep.subr.bf16.mxu0 %v1843_v28  ;;  %v1937_v12 = vpack.c.bf16 %v464_v11, %v463_v9  ;;  %v684_v9 = vld [vmem:[#allocation2 + $0x8] sm:$0xff] }
  0x41   :  { %1846 = vmatpush3.bf16.msra.mxu0 %v1843_v28  ;;  %v1247_v28 = vld [vmem:[%s2635_s1 + $0x130] sm:$0xff] }
  0x42   :  { %1848 = vmatprep.subr.bf16.mxu0 %v1847_v34  ;;  %v1895_v30 = vpack.c.bf16 %v1248_v29, %v1247_v28 }
  0x45   :  { %1850 = vmatpush3.bf16.msra.mxu0 %v1847_v34  ;;  %v1899_v34 = vpack.c.bf16 %v1250_v32, %v1249_v31 }
  0x46   :  { %1852 = vmatprep.subr.bf16.mxu0 %v1851_v38 }
  0x48   :  { %1484 = vmatmul.mubr.f32.vlgmr.msra.gmra.mrb[0].mxu0 %v2333_v43 }
  0x49   :  { %1854 = vmatpush3.bf16.msra.mxu0 %v1851_v38  ;;  %1486 = vmatprep.mubr.f32.mxu0 %v2339_v46  ;;  %v1253_v38 = vld [vmem:[%s2635_s1 + $0x160] sm:$0xff] }
  0x4a   :  { %1856 = vmatprep.subr.bf16.mxu0 %v1855_v45  ;;  %v1907_v41 = vpack.c.bf16 %v1254_v40, %v1253_v38 }
  0x4c   :  { %1487 = vmatmul.mubr.f32.gmra.mrb[2].mxu0 %v2328_v42 }
  0x4d   :  { %1858 = vmatpush3.bf16.msra.mxu0 %v1855_v45  ;;  %1521 = vmatprep.mubr.msk.f32.mxu0 %vm2352_vm1, %v122_v53  ;;  %v1256_v45 = vld [vmem:[%s2635_s1 + $0x178] sm:$0xff]  ;;  %v130_v53 = vrot.slane %v2328_v42, 1 }
  0x4e   :  { %1860 = vmatprep.subr.bf16.mxu0 %v1859_v51  ;;  %v1911_v48 = vpack.c.bf16 %v1256_v45, %v1255_v44  ;;  %v701_v44 = vld [vmem:[#allocation2 + $0x88] sm:$0xff] }
  0x4f   :  { %v132_v57 = vsel %vm131_vm3, %v129_v49, %v130_v53 }
  0x51   :  { %1862 = vmatpush3.bf16.msra.mxu0 %v1859_v51  ;;  %v56_v51 = vadd.s32 24, %v2316_v39 }
  0x52   :  { %1864 = vmatprep.subr.bf16.mxu0 %v1863_v56 }
  0x55   :  { %1866 = vmatpush3.bf16.msra.mxu0 %v1863_v56  ;;  %v82_v56 = vand.u32 15, %v56_v51  ;;  %v705_v51 = vld [vmem:[#allocation2 + $0xa8] sm:$0xff] }
  0x56   :  { %1868 = vmatprep.subr.bf16.mxu0 %v1867_v59 }
  0x57   :  { %vm2478_vm5 = vcmp.ne.s32.totalorder %v82_v56, 15  ;;  %v707_v56 = vld [vmem:[#allocation2 + $0xb8] sm:$0xff] }
  0x59   :  { %1870 = vmatpush3.bf16.msra.mxu0 %v1867_v59  ;;  %v135_v59 = vsel %vm131_vm3, %v130_v53, %v127_v20  ;;  %v1971_v53 = vpack.c.bf16 %v705_v51, %v704_v50 }
  0x5a   :  { %1872 = vmatprep.subr.bf16.mxu0 %v1871_v62 }
  0x5d   :  { %1874 = vmatpush3.bf16.msra.mxu0 %v1871_v62  ;;  %v1925_v62 = vpack.c.bf16 %v456_v61, %v455_v60  ;;  %v709_v60 = vld [vmem:[#allocation2 + $0xc8] sm:$0xff] }
  0x5e   :  { %1876 = vmatprep.subr.bf16.mxu0 %v1875_v2 }
  0x5f   :  { %1926 = vmatpush3.bf16.msra.mxu1 %v1925_v62 }
  0x60   :  { %1927 = vmatprep.subr.bf16.mxu1 %v2187_v0 }
  0x61   :  { %1878 = vmatpush3.bf16.msra.mxu0 %v1875_v2  ;;  %v1928_v2 = vpack.c.bf16 %v458_v1, %v457_v63  ;;  %v711_v63 = vld [vmem:[#allocation2 + $0xd8] sm:$0xff] }
  0x62   :  { %1880 = vmatprep.subr.bf16.mxu0 %v1879_v6 }
  0x63   :  { %1929 = vmatpush3.bf16.msra.mxu1 %v1928_v2 }
  0x64   :  { %1930 = vmatprep.subr.bf16.mxu1 %v2187_v0 }
  0x65   :  { %1882 = vmatpush3.bf16.msra.mxu0 %v1879_v6  ;;  %v461_v6 = vld [vmem:[#allocation4 + $0x60] sm:$0xff] }
  0x66   :  { %1884 = vmatprep.subr.bf16.mxu0 %v1883_v13  ;;  %v1934_v8 = vpack.c.bf16 %v462_v7, %v461_v6  ;;  %v715_v6 = vld [vmem:[#allocation2 + $0xf8] sm:$0xff] }
  0x67   :  { %1932 = vmatpush3.bf16.msra.mxu1 %v1931_v5  ;;  %v1991_v7 = vpack.c.bf16 %v715_v6, %v714_v4 }
  0x68   :  { %1522 = vmatmul.mubr.f32.vlgmr.msra.gmra.mrb[0].mxu0 %v121_v16  ;;  %1933 = vmatprep.subr.bf16.mxu1 %v2187_v0 }
  0x69   :  { %1886 = vmatpush3.bf16.msra.mxu0 %v1883_v13  ;;  %1524 = vmatprep.mubr.msk.f32.mxu0 %vm2410_vm2, %v120_v19  ;;  %v2189_v13 = vmov 0.0  }
  0x6a   :  { %1888 = vmatprep.subr.bf16.mxu0 %v1887_v18  ;;  %1597 = vmatprep.mubr.msk.f32.mxu1 %vm2188_vm6, %v2189_v13 }
  0x6b   :  { %1935 = vmatpush3.bf16.msra.mxu1 %v1934_v8 }
  0x6c   :  { %1525 = vmatmul.mubr.f32.gmra.mrb[2].mxu0 %v119_v10  ;;  %1936 = vmatprep.subr.bf16.mxu1 %v2187_v0 }
  0x6d   :  { %1890 = vmatpush3.bf16.msra.mxu0 %v1887_v18  ;;  %1559 = vmatprep.mubr.f32.mxu0 %v134_v26 }
  0x6e   :  { %1892 = vmatprep.subr.bf16.mxu0 %v1891_v25 }
  0x6f   :  { %1938 = vmatpush3.bf16.msra.mxu1 %v1937_v12 }
  0x70   :  { %1939 = vmatprep.subr.bf16.mxu1 %v2187_v0 }
  0x71   :  { %1894 = vmatpush3.bf16.msra.mxu0 %v1891_v25 }
  0x72   :  { %1896 = vmatprep.subr.bf16.mxu0 %v1895_v30 }
  0x75   :  { %1898 = vmatpush3.bf16.msra.mxu0 %v1895_v30 }
  0x76   :  { %1900 = vmatprep.subr.bf16.mxu0 %v1899_v34 }
  0x79   :  { %1902 = vmatpush3.bf16.msra.mxu0 %v1899_v34 }
  0x7a   :  { %1904 = vmatprep.subr.bf16.mxu0 %v1903_v37 }
  0x7d   :  { %1906 = vmatpush3.bf16.msra.mxu0 %v1903_v37 }
  0x7e   :  { %1908 = vmatprep.subr.bf16.mxu0 %v1907_v41 }
  0x81   :  { %1910 = vmatpush3.bf16.msra.mxu0 %v1907_v41  ;;  %v700_v41 = vld [vmem:[#allocation2 + $0x80] sm:$0xff] }
  0x82   :  { %1912 = vmatprep.subr.bf16.mxu0 %v1911_v48  ;;  %v1963_v45 = vpack.c.bf16 %v701_v44, %v700_v41  ;;  %v649_v44 = vsub.s32 1, %v2316_v39 }
  0x85   :  { %1914 = vmatpush3.bf16.msra.mxu0 %v1911_v48  ;;  %v703_v48 = vld [vmem:[#allocation2 + $0x98] sm:$0xff] }
  0x86   :  { %2059 = vmatprep.subr.bf16.mxu0 %v2187_v0  ;;  %v1967_v49 = vpack.c.bf16 %v703_v48, %v702_v47 }
  0x88   :  { %1560 = vmatmul.mubr.msk.f32.vlgmr.msra.gmra.mrb[0].mxu0 %vm2467_vm4, %v133_v55  ;;  %v706_v55 = vld [vmem:[#allocation2 + $0xb0] sm:$0xff] }
  0x89   :  { %1562 = vmatprep.mubr.f32.mxu0 %v132_v57  ;;  %v1975_v57 = vpack.c.bf16 %v707_v56, %v706_v55 }
  0x8c   :  { %1563 = vmatmul.mubr.msk.f32.gmra.mrb[2].mxu0 %vm2478_vm5, %v135_v59  ;;  %v708_v59 = vld [vmem:[#allocation2 + $0xc0] sm:$0xff] }
  0x8d   :  { %1781 = vmatprep.mubr.msk.f32.mxu0 %vm2188_vm6, %v2189_v13  ;;  %v1979_v61 = vpack.c.bf16 %v709_v60, %v708_v59  ;;  %v685_v59 = vld [vmem:[#allocation2 + $0x10] sm:$0xff]  ;;  %v686_v60 = vld [vmem:[#allocation2 + $0x18] sm:$0xff] }
 0x15b   :  { %v2495_v14 = vpop.f32.mrb[0].mxu0 }
 0x15c   :  { %v475_v15 = vmul.f32 %v2495_v14, %v2495_v14  ;;  %v2499_v16 = vpop.f32.mrb[1].mxu0 }
 0x15d   :  { %v465_v18 = vadd.f32 %v2495_v14, %v2499_v16  ;;  %v474_v19 = vmul.f32 %v2499_v16, %v2499_v16 }
 0x15f   :  { %v478_v20 = vadd.f32 %v475_v15, %v474_v19  ;;  %v2505_v21 = vpop.f32.mrb[2].mxu0  ;;  %v994_v19 = vld [vmem:[#allocation4 + $0x88] sm:$0xff] }
 0x160   :  { %v2507_v22 = vpop.f32.mrb[3].mxu0  ;;  %v477_v25 = vmul.f32 %v2505_v21, %v2505_v21 }
 0x161   :  { %v466_v23 = vadd.f32 %v465_v18, %v2507_v22  ;;  %v476_v10 = vmul.f32 %v2507_v22, %v2507_v22  ;;  %v993_v18 = vld [vmem:[#allocation4 + $0x80] sm:$0xff] }
 0x163   :  { %v467_v26 = vadd.f32 %v2505_v21, %v466_v23  ;;  %v479_v28 = vadd.f32 %v478_v20, %v476_v10  ;;  %v995_v20 = vld [vmem:[#allocation4 + $0x90] sm:$0xff]  ;;  %v2530_v23 = vpack.c.bf16 %v994_v19, %v993_v18  ;;  %v996_v10 = vld [vmem:[#allocation4 + $0x98] sm:$0xff] }
 0x165   :  { %v468_v29 = vrot.slane %v467_v26, 4  ;;  %v480_v30 = vadd.f32 %v479_v28, %v477_v25  ;;  %2061 = vmatpush3.bf16.msra.mxu0 %v2530_v23  ;;  %v2533_v25 = vpack.c.bf16 %v996_v10, %v995_v20  ;;  %v998_v28 = vld [vmem:[#allocation4 + $0xa8] sm:$0xff] }
 0x166   :  { %2062 = vmatprep.subr.bf16.mxu0 %v2187_v0 }
 0x167   :  { %v469_v31 = vadd.f32 %v468_v29, %v467_v26  ;;  %v481_v37 = vrot.slane %v480_v30, 4  ;;  %v997_v26 = vld [vmem:[#allocation4 + $0xa0] sm:$0xff] }
 0x168   :  { %v2537_v29 = vpack.c.bf16 %v998_v28, %v997_v26  ;;  %v689_v26 = vld [vmem:[#allocation2 + $0x30] sm:$0xff]  ;;  %v690_v28 = vld [vmem:[#allocation2 + $0x38] sm:$0xff] }
 0x169   :  { %v470_v32 = vrot.slane %v469_v31, 2  ;;  %v482_v38 = vadd.f32 %v481_v37, %v480_v30  ;;  %2064 = vmatpush3.bf16.msra.mxu0 %v2533_v25 }
 0x16a   :  { %2065 = vmatprep.subr.bf16.mxu0 %v2187_v0 }
 0x16b   :  { %v471_v34 = vadd.f32 %v470_v32, %v469_v31 }
 0x16d   :  { %v472_v35 = vrot.slane %v471_v34, 1  ;;  %2067 = vmatpush3.bf16.msra.mxu0 %v2537_v29 }
 0x16e   :  { %2068 = vmatprep.subr.bf16.mxu0 %v2187_v0 }
 0x16f   :  { %v473_v36 = vadd.f32 %v472_v35, %v471_v34 }
 0x171   :  { %1598 = vmatmul.mubr.f32.vlgmr.msra.gmra.mrb[0].mxu1 %v473_v36 }
 0x172   :  { %1941 = vmatpush3.bf16.msra.mxu1 %v2293_v24  ;;  %1632 = vmatprep.mubr.msk.f32.mxu1 %vm2188_vm6, %v2189_v13  ;;  %v483_v24 = vrot.slane %v482_v38, 2 }
 0x173   :  { %1942 = vmatprep.subr.bf16.mxu1 %v2187_v0 }
 0x174   :  { %v484_v40 = vadd.f32 %v483_v24, %v482_v38  ;;  %v2545_v38 = vld [vmem:[%s2638_s4] sm:$0xf]  ;;  %v641_v24 = vsub.s32 0, %v2316_v39 }
 0x176   :  { %1944 = vmatpush3.bf16.msra.mxu1 %v2296_v27  ;;  %v485_v27 = vrot.slane %v484_v40, 1 }
 0x177   :  { %1945 = vmatprep.subr.bf16.mxu1 %v2187_v0 }
 0x17a   :  { %1947 = vmatpush3.bf16.msra.mxu1 %v2306_v33  ;;  %v486_v33 = vadd.f32 %v485_v27, %v484_v40 }
 0x17b   :  { %1948 = vmatprep.subr.bf16.mxu1 %v2187_v0 }
 0x17e   :  { %1950 = vmatpush3.bf16.msra.mxu1 %v1925_v62  ;;  %v710_v62 = vld [vmem:[#allocation2 + $0xd0] sm:$0xff] }
 0x17f   :  { %1951 = vmatprep.subr.bf16.mxu1 %v2187_v0  ;;  %v1983_v1 = vpack.c.bf16 %v711_v63, %v710_v62 }
 0x182   :  { %1953 = vmatpush3.bf16.msra.mxu1 %v1928_v2  ;;  %v712_v2 = vld [vmem:[#allocation2 + $0xe0] sm:$0xff] }
 0x183   :  { %1954 = vmatprep.subr.bf16.mxu1 %v2187_v0 }
 0x186   :  { %1956 = vmatpush3.bf16.msra.mxu1 %v1931_v5  ;;  %v1987_v5 = vpack.c.bf16 %v713_v3, %v712_v2  ;;  %v687_v3 = vld [vmem:[#allocation2 + $0x20] sm:$0xff] }
 0x187   :  { %1957 = vmatprep.subr.bf16.mxu1 %v2187_v0 }
 0x18a   :  { %1959 = vmatpush3.bf16.msra.mxu1 %v1934_v8  ;;  %v683_v8 = vld [vmem:[#allocation2] sm:$0xff] }
 0x18b   :  { %1960 = vmatprep.subr.bf16.mxu1 %v2187_v0  ;;  %v2527_v11 = vpack.c.bf16 %v684_v9, %v683_v8 }
 0x18e   :  { %1962 = vmatpush3.bf16.msra.mxu1 %v1937_v12 }
 0x18f   :  { %1964 = vmatprep.subr.bf16.mxu1 %v1963_v45 }
 0x191   :  { %1633 = vmatmul.mubr.f32.vlgmr.msra.gmra.mrb[2].mxu1 %v486_v33 }
 0x192   :  { %1966 = vmatpush3.bf16.msra.mxu1 %v1963_v45 }
 0x193   :  { %1968 = vmatprep.subr.bf16.mxu1 %v1967_v49 }
 0x196   :  { %1970 = vmatpush3.bf16.msra.mxu1 %v1967_v49 }
 0x197   :  { %1972 = vmatprep.subr.bf16.mxu1 %v1971_v53 }
 0x19a   :  { %1974 = vmatpush3.bf16.msra.mxu1 %v1971_v53 }
 0x19b   :  { %1976 = vmatprep.subr.bf16.mxu1 %v1975_v57 }
 0x19e   :  { %1978 = vmatpush3.bf16.msra.mxu1 %v1975_v57 }
 0x19f   :  { %1980 = vmatprep.subr.bf16.mxu1 %v1979_v61 }
 0x1a2   :  { %1982 = vmatpush3.bf16.msra.mxu1 %v1979_v61 }
 0x1a3   :  { %1984 = vmatprep.subr.bf16.mxu1 %v1983_v1 }
 0x1a6   :  { %1986 = vmatpush3.bf16.msra.mxu1 %v1983_v1 }
 0x1a7   :  { %1988 = vmatprep.subr.bf16.mxu1 %v1987_v5 }
 0x1aa   :  { %1990 = vmatpush3.bf16.msra.mxu1 %v1987_v5 }
 0x1ab   :  { %1992 = vmatprep.subr.bf16.mxu1 %v1991_v7 }
 0x1ae   :  { %1994 = vmatpush3.bf16.msra.mxu1 %v1991_v7 }
 0x1af   :  { %1996 = vmatprep.subr.bf16.mxu1 %v2527_v11 }
 0x244   :  { %v553_v12 = vpop.f32.mrb[0].mxu1 }
 0x245   :  { %v1599_v15 = vpop.f32.mrb[1].mxu1  ;;  %v557_v30 = vmul.f32 0.001953125, %v553_v12 }
 0x247   :  { %v629_v32 = vmul.f32 %v557_v30, %v557_v30 }
 0x264   :  { %v624_v31 = vpop.f32.mrb[2].mxu1 }
 0x265   :  { %v628_v34 = vmul.f32 0.001953125, %v624_v31  ;;  %v1634_v35 = vpop.f32.mrb[3].mxu1 }
 0x266   :  { %v692_v35 = vld [vmem:[#allocation2 + $0x48] sm:$0xff] }
 0x267   :  { %v630_v36 = vsub.f32 %v628_v34, %v629_v32  ;;  %v2007_v32 = vpack.c.bf16 %v690_v28, %v689_v26  ;;  %v691_v34 = vld [vmem:[#allocation2 + $0x40] sm:$0xff]  ;;  %v1008_v26 = vld [vmem:[#allocation4 + $0xf8] sm:$0xff] }
 0x269   :  { %v631_v37 = vadd.f32 1e-05, %v630_v36  ;;  %v2011_v36 = vpack.c.bf16 %v692_v35, %v691_v34 }
 0x26b   :  { %2130 = vrsqrt.f32 %v631_v37  ;;  %v693_v37 = vld [vmem:[#allocation2 + $0x50] sm:$0xff] }
 0x275   :  { %v2131_v40 = vpop.eup %2130 }
 0x276   :  { %v633_v27 = vmul.f32 %v2131_v40, %v2545_v38 }
 0x278   :  { %v634_v33 = vmul.f32 %v633_v27, %v557_v30  ;;  %v642_v41 = vrot.slane %v633_v27, %v641_v24  ;;  %v694_v24 = vld [vmem:[#allocation2 + $0x58] sm:$0xff]  ;;  %v695_v27 = vld [vmem:[#allocation2 + $0x60] sm:$0xff] }
 0x279   :  { %v2015_v40 = vpack.c.bf16 %v694_v24, %v693_v37 }
 0x27a   :  { %v636_v45 = vrot.slane %v634_v33, 7  ;;  %v643_v47 = vmul.f32 %v642_v41, %v2499_v16  ;;  %v644_v48 = vmul.f32 %v2495_v14, %v642_v41  ;;  %v645_v49 = vmul.f32 %v642_v41, %v2507_v22  ;;  %v688_v14 = vld [vmem:[#allocation2 + $0x28] sm:$0xff] }
 0x27b   :  { %v646_v50 = vmul.f32 %v2505_v21, %v642_v41  ;;  %v1999_v16 = vpack.c.bf16 %v686_v60, %v685_v59  ;;  %v2003_v15 = vpack.c.bf16 %v688_v14, %v687_v3  ;;  %v696_v33 = vld [vmem:[#allocation2 + $0x68] sm:$0xff]  ;;  %v893_v59 = vld [vmem:[#allocation2 + $0x130] sm:$0xff]  ;;  %v894_v60 = vld [vmem:[#allocation2 + $0x138] sm:$0xff] }
 0x27c   :  { %v638_v51 = vsub.f32 %v2545_v38, %v636_v45  ;;  %v2019_v41 = vpack.c.bf16 %v696_v33, %v695_v27  ;;  %v899_v3 = vld [vmem:[#allocation2 + $0x160] sm:$0xff]  ;;  %v900_v14 = vld [vmem:[#allocation2 + $0x168] sm:$0xff] }
 0x27e   :  { %v650_v53 = vrot.slane %v638_v51, %v649_v44  ;;  %v697_v44 = vld [vmem:[#allocation2 + $0x70] sm:$0xff]  ;;  %v890_v51 = vld [vmem:[#allocation2 + $0x118] sm:$0xff] }
 0x27f   :  { %v2023_v45 = vpack.c.bf16 %v698_v52, %v697_v44 }
 0x280   :  { %v651_v55 = vadd.f32 %v650_v53, %v643_v47  ;;  %v652_v56 = vadd.f32 %v650_v53, %v644_v48  ;;  %v653_v57 = vadd.f32 %v650_v53, %v645_v49  ;;  %v654_v61 = vadd.f32 %v650_v53, %v646_v50  ;;  %v887_v47 = vld [vmem:[#allocation2 + $0x100] sm:$0xff]  ;;  %v888_v48 = vld [vmem:[#allocation2 + $0x108] sm:$0xff]  ;;  %v889_v50 = vld [vmem:[#allocation2 + $0x110] sm:$0xff] }
 0x281   :  { %v2027_v49 = vpack.c.bf16 %v888_v48, %v887_v47  ;;  %v2031_v53 = vpack.c.bf16 %v890_v51, %v889_v50 }
 0x282   :  { %v655_v62 = vmax.f32 %v651_v55, 0.0  ;;  %v656_v63 = vmax.f32 %v652_v56, 0.0  ;;  %v657_v1 = vmax.f32 %v653_v57, 0.0  ;;  %v658_v2 = vmax.f32 %v654_v61, 0.0  ;;  %v891_v55 = vld [vmem:[#allocation2 + $0x120] sm:$0xff]  ;;  %v892_v56 = vld [vmem:[#allocation2 + $0x128] sm:$0xff] }
 0x283   :  { %v2035_v57 = vpack.c.bf16 %v892_v56, %v891_v55  ;;  %v2039_v61 = vpack.c.bf16 %v894_v60, %v893_v59 }
 0x284   :  { %1667 = vmatprep.mubr.f32.mxu1 %v655_v62  ;;  %v673_v22 = vrot.slane %v657_v1, 1  ;;  %v659_v4 = vrot.slane %v655_v62, 7  ;;  %v662_v21 = vrot.slane %v658_v2, 7  ;;  %v660_v5 = vrot.slane %v656_v63, 7 }
 0x285   :  { %1668 = vmatmul.mubr.f32.vlgmr.msra.gmra.mrb[4].mxu1 %v656_v63  ;;  %v661_v6 = vrot.slane %v657_v1, 7  ;;  %v671_v7 = vrot.slane %v655_v62, 1  ;;  %v672_v8 = vrot.slane %v656_v63, 1  ;;  %v674_v9 = vrot.slane %v658_v2, 1  ;;  %v895_v62 = vld [vmem:[#allocation2 + $0x140] sm:$0xff]  ;;  %v896_v63 = vld [vmem:[#allocation2 + $0x148] sm:$0xff] }
 0x286   :  { %1998 = vmatpush3.bf16.msra.mxu1 %v2527_v11  ;;  %1670 = vmatprep.mubr.f32.mxu1 %v657_v1  ;;  %v666_v12 = vsel %vm118_vm0, %v662_v21, %v659_v4  ;;  %v665_v18 = vsel %vm118_vm0, %v659_v4, %v660_v5  ;;  %v2043_v1 = vpack.c.bf16 %v896_v63, %v895_v62  ;;  %v901_v4 = vld [vmem:[#allocation2 + $0x170] sm:$0xff] }
 0x287   :  { %2000 = vmatprep.subr.bf16.mxu1 %v1999_v16  ;;  %v664_v19 = vsel %vm118_vm0, %v660_v5, %v661_v6  ;;  %v663_v20 = vsel %vm118_vm0, %v661_v6, %v662_v21  ;;  %v677_v10 = vsel %vm131_vm3, %v671_v7, %v672_v8  ;;  %v2568_v11 = vsel %vm131_vm3, %v672_v8, %v673_v22  ;;  %v902_v21 = vld [vmem:[#allocation2 + $0x178] sm:$0xff]  ;;  %v999_v6 = vld [vmem:[#allocation4 + $0xb0] sm:$0xff] }
 0x288   :  { %v2572_v30 = vsel %vm131_vm3, %v673_v22, %v674_v9  ;;  %v2576_v31 = vsel %vm131_vm3, %v674_v9, %v671_v7  ;;  %v2051_v22 = vpack.c.bf16 %v900_v14, %v899_v3  ;;  %v2055_v5 = vpack.c.bf16 %v902_v21, %v901_v4  ;;  %v1000_v7 = vld [vmem:[#allocation4 + $0xb8] sm:$0xff]  ;;  %v1001_v9 = vld [vmem:[#allocation4 + $0xc0] sm:$0xff] }
 0x289   :  { %1671 = vmatmul.mubr.f32.gmra.mrb[6].mxu1 %v658_v2  ;;  %v897_v2 = vld [vmem:[#allocation2 + $0x150] sm:$0xff]  ;;  %v2069_v8 = vpack.c.bf16 %v1000_v7, %v999_v6  ;;  %v1191_v3 = vsub.s32 2, %v2316_v39  ;;  %v1199_v21 = vsub.s32 3, %v2316_v39 }
 0x28a   :  { %2002 = vmatpush3.bf16.msra.mxu1 %v1999_v16  ;;  %1705 = vmatprep.mubr.msk.f32.mxu1 %vm2352_vm1, %v666_v12  ;;  %v898_v16 = vld [vmem:[#allocation2 + $0x158] sm:$0xff]  ;;  %v1002_v12 = vld [vmem:[#allocation4 + $0xc8] sm:$0xff] }
 0x28b   :  { %2004 = vmatprep.subr.bf16.mxu1 %v2003_v15  ;;  %v2047_v17 = vpack.c.bf16 %v898_v16, %v897_v2  ;;  %2070 = vmatpush3.bf16.msra.mxu0 %v2069_v8 }
 0x28c   :  { %2071 = vmatprep.subr.bf16.mxu0 %v2187_v0 }
 0x28e   :  { %2006 = vmatpush3.bf16.msra.mxu1 %v2003_v15  ;;  %v2072_v15 = vpack.c.bf16 %v1002_v12, %v1001_v9 }
 0x28f   :  { %2008 = vmatprep.subr.bf16.mxu1 %v2007_v32 }
 0x290   :  { %2073 = vmatpush3.bf16.msra.mxu0 %v2072_v15 }
 0x291   :  { %2074 = vmatprep.subr.bf16.mxu0 %v2187_v0 }
 0x292   :  { %2010 = vmatpush3.bf16.msra.mxu1 %v2007_v32 }
 0x293   :  { %2012 = vmatprep.subr.bf16.mxu1 %v2011_v36 }
 0x296   :  { %2014 = vmatpush3.bf16.msra.mxu1 %v2011_v36 }
 0x297   :  { %2016 = vmatprep.subr.bf16.mxu1 %v2015_v40 }
 0x29a   :  { %2018 = vmatpush3.bf16.msra.mxu1 %v2015_v40 }
 0x29b   :  { %2020 = vmatprep.subr.bf16.mxu1 %v2019_v41 }
 0x29e   :  { %2022 = vmatpush3.bf16.msra.mxu1 %v2019_v41 }
 0x29f   :  { %2024 = vmatprep.subr.bf16.mxu1 %v2023_v45 }
 0x2a2   :  { %2026 = vmatpush3.bf16.msra.mxu1 %v2023_v45 }
 0x2a3   :  { %2028 = vmatprep.subr.bf16.mxu1 %v2027_v49 }
 0x2a5   :  { %1706 = vmatmul.mubr.f32.vlgmr.msra.gmra.mrb[4].mxu1 %v665_v18  ;;  %v1004_v18 = vld [vmem:[#allocation4 + $0xd8] sm:$0xff] }
 0x2a6   :  { %1708 = vmatprep.mubr.msk.f32.mxu1 %vm2410_vm2, %v664_v19  ;;  %2030 = vmatpush3.bf16.msra.mxu1 %v2027_v49  ;;  %v2075_v19 = vpack.c.bf16 %v1004_v18, %v1003_v54 }
 0x2a7   :  { %2032 = vmatprep.subr.bf16.mxu1 %v2031_v53 }
 0x2a8   :  { %2076 = vmatpush3.bf16.msra.mxu0 %v2075_v19 }
 0x2a9   :  { %1709 = vmatmul.mubr.f32.gmra.mrb[6].mxu1 %v663_v20  ;;  %2077 = vmatprep.subr.bf16.mxu0 %v2187_v0  ;;  %v1006_v20 = vld [vmem:[#allocation4 + $0xe8] sm:$0xff] }
 0x2aa   :  { %2034 = vmatpush3.bf16.msra.mxu1 %v2031_v53  ;;  %1743 = vmatprep.mubr.f32.mxu1 %v677_v10  ;;  %v2078_v10 = vpack.c.bf16 %v1006_v20, %v1005_v58  ;;  %v2134_v20 = vld [vmem:[%s2634_s0] sm:$0xff] }
 0x2ab   :  { %2036 = vmatprep.subr.bf16.mxu1 %v2035_v57 }
 0x2ac   :  { %2079 = vmatpush3.bf16.msra.mxu0 %v2078_v10 }
 0x2ad   :  { %2080 = vmatprep.subr.bf16.mxu0 %v2187_v0 }
 0x2ae   :  { %2038 = vmatpush3.bf16.msra.mxu1 %v2035_v57 }
 0x2af   :  { %2040 = vmatprep.subr.bf16.mxu1 %v2039_v61 }
 0x2b2   :  { %2042 = vmatpush3.bf16.msra.mxu1 %v2039_v61 }
 0x2b3   :  { %2044 = vmatprep.subr.bf16.mxu1 %v2043_v1 }
 0x2b6   :  { %2046 = vmatpush3.bf16.msra.mxu1 %v2043_v1 }
 0x2b7   :  { %2048 = vmatprep.subr.bf16.mxu1 %v2047_v17 }
 0x2ba   :  { %2050 = vmatpush3.bf16.msra.mxu1 %v2047_v17 }
 0x2bb   :  { %2052 = vmatprep.subr.bf16.mxu1 %v2051_v22 }
 0x2be   :  { %2054 = vmatpush3.bf16.msra.mxu1 %v2051_v22 }
 0x2bf   :  { %2056 = vmatprep.subr.bf16.mxu1 %v2055_v5 }
 0x2c2   :  { %2058 = vmatpush3.bf16.msra.mxu1 %v2055_v5 }
 0x2c5   :  { %1744 = vmatmul.mubr.msk.f32.vlgmr.msra.gmra.mrb[4].mxu1 %vm2467_vm4, %v2568_v11  ;;  %v1007_v11 = vld [vmem:[#allocation4 + $0xf0] sm:$0xff] }
 0x2c6   :  { %1746 = vmatprep.mubr.f32.mxu1 %v2572_v30  ;;  %v2081_v28 = vpack.c.bf16 %v1008_v26, %v1007_v11 }
 0x2c8   :  { %2082 = vmatpush3.bf16.msra.mxu0 %v2081_v28 }
 0x2c9   :  { %1747 = vmatmul.mubr.msk.f32.gmra.mrb[6].mxu1 %vm2478_vm5, %v2576_v31  ;;  %2083 = vmatprep.subr.bf16.mxu0 %v2187_v0 }
 0x398   :  { %v2594_v30 = vpop.f32.mrb[4].mxu1 }
 0x399   :  { %v1019_v31 = vmul.f32 %v2594_v30, %v2594_v30  ;;  %v969_v32 = vpop.f32.mrb[5].mxu1 }
 0x39a   :  { %v1009_v34 = vadd.f32 %v2594_v30, %v969_v32  ;;  %v1018_v35 = vmul.f32 %v969_v32, %v969_v32 }
 0x39c   :  { %v1022_v36 = vadd.f32 %v1019_v31, %v1018_v35  ;;  %v1748_v37 = vpop.f32.mrb[6].mxu1 }
 0x39d   :  { %v979_v24 = vpop.f32.mrb[7].mxu1  ;;  %v1021_v33 = vmul.f32 %v1748_v37, %v1748_v37 }
 0x39e   :  { %v1010_v40 = vadd.f32 %v1009_v34, %v979_v24  ;;  %v1020_v27 = vmul.f32 %v979_v24, %v979_v24 }
 0x3a0   :  { %v1011_v41 = vadd.f32 %v1748_v37, %v1010_v40  ;;  %v1023_v44 = vadd.f32 %v1022_v36, %v1020_v27 }
 0x3a2   :  { %v1012_v52 = vrot.slane %v1011_v41, 4  ;;  %v1024_v45 = vadd.f32 %v1023_v44, %v1021_v33 }
 0x3a4   :  { %v1013_v47 = vadd.f32 %v1012_v52, %v1011_v41  ;;  %v1025_v53 = vrot.slane %v1024_v45, 4 }
 0x3a6   :  { %v1014_v48 = vrot.slane %v1013_v47, 2  ;;  %v1026_v55 = vadd.f32 %v1025_v53, %v1024_v45 }
 0x3a8   :  { %v1015_v49 = vadd.f32 %v1014_v48, %v1013_v47 }
 0x3aa   :  { %v1016_v50 = vrot.slane %v1015_v49, 1 }
 0x3ac   :  { %v1017_v51 = vadd.f32 %v1016_v50, %v1015_v49 }
 0x3ae   :  { %1782 = vmatmul.mubr.f32.vlgmr.msra.gmra.mrb[4].mxu0 %v1017_v51 }
 0x3af   :  { %2085 = vmatpush3.bf16.msra.mxu0 %v2530_v23  ;;  %1816 = vmatprep.mubr.msk.f32.mxu0 %vm2188_vm6, %v2189_v13  ;;  %v1027_v23 = vrot.slane %v1026_v55, 2 }
 0x3b0   :  { %2086 = vmatprep.subr.bf16.mxu0 %v2187_v0 }
 0x3b1   :  { %v1028_v13 = vadd.f32 %v1027_v23, %v1026_v55 }
 0x3b3   :  { %2088 = vmatpush3.bf16.msra.mxu0 %v2533_v25  ;;  %v1029_v25 = vrot.slane %v1028_v13, 1 }
 0x3b4   :  { %2089 = vmatprep.subr.bf16.mxu0 %v2187_v0 }
 0x3b7   :  { %2091 = vmatpush3.bf16.msra.mxu0 %v2537_v29  ;;  %v1030_v29 = vadd.f32 %v1029_v25, %v1028_v13 }
 0x3b8   :  { %2092 = vmatprep.subr.bf16.mxu0 %v2187_v0 }
 0x3bb   :  { %2094 = vmatpush3.bf16.msra.mxu0 %v2069_v8 }
 0x3bc   :  { %2095 = vmatprep.subr.bf16.mxu0 %v2187_v0 }
 0x3bf   :  { %2097 = vmatpush3.bf16.msra.mxu0 %v2072_v15 }
 0x3c0   :  { %2098 = vmatprep.subr.bf16.mxu0 %v2187_v0 }
 0x3c3   :  { %2100 = vmatpush3.bf16.msra.mxu0 %v2075_v19 }
 0x3c4   :  { %2101 = vmatprep.subr.bf16.mxu0 %v2187_v0 }
 0x3c7   :  { %2103 = vmatpush3.bf16.msra.mxu0 %v2078_v10 }
 0x3c8   :  { %2104 = vmatprep.subr.bf16.mxu0 %v2187_v0 }
 0x3cb   :  { %2106 = vmatpush3.bf16.msra.mxu0 %v2081_v28 }
 0x3ce   :  { %1817 = vmatmul.mubr.f32.vlgmr.msra.gmra.mrb[6].mxu0 %v1030_v29 }
 0x481   :  { %v1097_v56 = vpop.f32.mrb[4].mxu0 }
 0x482   :  { %v1783_v57 = vpop.f32.mrb[5].mxu0  ;;  %v1101_v59 = vmul.f32 0.001953125, %v1097_v56 }
 0x484   :  { %v1173_v61 = vmul.f32 %v1101_v59, %v1101_v59  ;;  %v1182_v14 = vrot.slane %v1101_v59, 6 }
 0x4a1   :  { %v1168_v60 = vpop.f32.mrb[6].mxu0 }
 0x4a2   :  { %v1172_v62 = vmul.f32 0.001953125, %v1168_v60  ;;  %v1818_v63 = vpop.f32.mrb[7].mxu0 }
 0x4a4   :  { %v1174_v1 = vsub.f32 %v1172_v62, %v1173_v61 }
 0x4a6   :  { %v1175_v2 = vadd.f32 1e-05, %v1174_v1 }
 0x4a8   :  { %2132 = vrsqrt.f32 %v1175_v2 }
 0x4b2   :  { %v2133_v16 = vpop.eup %2132 }
 0x4b3   :  { %v1178_v17 = vrot.slane %v2133_v16, 6 }
 0x4b5   :  { %v1180_v0 = vmul.f32 %v1178_v17, %v2545_v38 }
 0x4b7   :  { %v1184_v22 = vmul.f32 %v1182_v14, %v1180_v0  ;;  %v1192_v4 = vrot.slane %v1180_v0, %v1191_v3 }
 0x4b9   :  { %v1186_v5 = vrot.slane %v1184_v22, 7  ;;  %v1193_v6 = vmul.f32 %v1192_v4, %v969_v32  ;;  %v1194_v7 = vmul.f32 %v2594_v30, %v1192_v4  ;;  %v1195_v8 = vmul.f32 %v1192_v4, %v979_v24 }
 0x4ba   :  { %v1196_v9 = vmul.f32 %v1748_v37, %v1192_v4 }
 0x4bb   :  { %v1188_v12 = vsub.f32 %v2545_v38, %v1186_v5 }
 0x4bd   :  { %v1200_v15 = vrot.slane %v1188_v12, %v1199_v21 }
 0x4bf   :  { %v1201_v54 = vadd.f32 %v1200_v15, %v1193_v6  ;;  %v1202_v18 = vadd.f32 %v1200_v15, %v1194_v7  ;;  %v1203_v19 = vadd.f32 %v1200_v15, %v1195_v8  ;;  %v1204_v58 = vadd.f32 %v1200_v15, %v1196_v9 }
 0x4c1   :  { %v1205_v10 = vadd.f32 %v2134_v20, %v1201_v54  ;;  %v1206_v39 = vadd.f32 %v1202_v18, %v2333_v43  ;;  %v1207_v11 = vadd.f32 %v1203_v19, %v2339_v46  ;;  %v1208_v26 = vadd.f32 %v1204_v58, %v2328_v42 }
 0x4c3   :  { %v1209_v28 = vmax.f32 %v1205_v10, 0.0  ;;  %v1210_v30 = vmax.f32 %v1206_v39, 0.0  ;;  %v1211_v31 = vmax.f32 %v1207_v11, 0.0  ;;  %v1212_v38 = vmax.f32 %v1208_v26, 0.0 }
 0x4c5   :  { %1213 = vst [vmem:[%s2639_s5] sm:$0xff] %v1209_v28  ;;  %1214 = vst [vmem:[%s2639_s5 + $0x8] sm:$0xff] %v1210_v30 }
 0x4c6   :  { %1215 = vst [vmem:[%s2639_s5 + $0x10] sm:$0xff] %v1211_v31  ;;  %1216 = vst [vmem:[%s2639_s5 + $0x18] sm:$0xff] %v1212_v38 }
 0x4c7   :  { %1221 = vsyncpa [#allocation3], 1 }
 0x4c8   :  { %1222 = vsyncpa [#allocation5], 1 }

</bundles_post_ra>
